<compile_context>
chip_gen: v6e
topology: v6e:2x2x1
jax: 0.10.0
libtpu: 0.0.40
codegen_flags: <defaults>
</compile_context>

<pallas_src>
import functools
import itertools

import jax
import jax.numpy as jnp
from jax.experimental import pallas as pl
from jax.experimental.pallas import tpu as pltpu

TM_MAX = 512  # max row-tile (lanes of the output tile)


def _round_up(x, m):
    return (x + m - 1) // m * m


# ---------------------------------------------------------------------------
# pltpu.roll direction probe (cached): returns s such that
#   pltpu.roll(x, (s*off) % n, axis=-1)[:, j] == x[:, j + off]
# ---------------------------------------------------------------------------
_ROLL_SIGN = None


def _roll_sign():
    global _ROLL_SIGN
    if _ROLL_SIGN is None:
        def k(x_ref, o_ref):
            o_ref[...] = pltpu.roll(x_ref[...], 1, axis=1)

        x = jax.lax.broadcasted_iota(jnp.int32, (8, 128), 1)
        y = pl.pallas_call(k, out_shape=jax.ShapeDtypeStruct((8, 128), jnp.int32))(x)
        # jnp.roll semantics (shift toward higher indices): y[:, 1] == 0.
        _ROLL_SIGN = -1 if int(y[0, 1]) == 0 else 1
    return _ROLL_SIGN


# ---------------------------------------------------------------------------
# Fused "tap" convolution kernel.
#
# A (channels-first, flattened padded grid) is streamed as (Kp, tm) blocks; n_blk
# consecutive blocks form the row window needed by all taps.  Each tap is a lane-rotate
# of the window by its flat offset; taps are stacked along sublanes and contracted in a
# single deep bf16 matmul against the (Cp, Kpad) weight.  Bias is fused; one store.
# ---------------------------------------------------------------------------
def _conv_tap_kernel(*args, n_blk, offsets, k_pad, roll_sign):
    a_refs = args[:n_blk]
    w_ref, b_ref, o_ref = args[n_blk], args[n_blk + 1], args[n_blk + 2]
    tm = o_ref.shape[-1]

    if n_blk == 1:
        window = a_refs[0][...]                                     # (Kp, tm) bf16
    else:
        window = jnp.concatenate([r[...] for r in a_refs], axis=1)  # (Kp, n_blk*tm) bf16
    wn = window.shape[-1]

    pieces = []
    for off in offsets:                                             # static unroll
        if off == 0:
            pieces.append(window[:, :tm])
        else:
            rot = pltpu.roll(window, (roll_sign * off) % wn, axis=1)
            pieces.append(rot[:, :tm])                              # == window[:, off:off+tm]
    if k_pad:
        pieces.append(jnp.zeros((k_pad, tm), window.dtype))
    cat = jnp.concatenate(pieces, axis=0)                           # (Kpad, tm) bf16

    acc = jnp.dot(w_ref[...], cat, preferred_element_type=jnp.float32)  # (Cp, tm) fp32
    o_ref[...] = acc + b_ref[...]                                   # fused bias, 1 store


def conv_taps(xp, taps, w_taps, bias, out_spatial):
    """Generic stride-1 tap convolution on a pre-padded channels-first activation.

    xp:      (Cin, N, Dp, Hp, Wp) padded activation (bf16 or f32)
    taps:    list of (kd, kh, kw) offsets into the padded grid
    w_taps:  (T, Cin, Cout) weights, one (Cin, Cout) matrix per tap
    bias:    (Cout,)
    returns: (Cout, N, Do, Ho, Wo) float32
    """
    Cin, N, Dp, Hp, Wp = xp.shape
    T, _, Cout = w_taps.shape
    Do, Ho, Wo = out_spatial

    Kp = _round_up(Cin, 8)                 # sublane pad only
    Cp = _round_up(Cout, 8)
    M_out = N * Dp * Hp * Wp               # compute on the padded grid; slice valid after
    offs = tuple(int((kd * Hp + kh) * Wp + kw) for (kd, kh, kw) in taps)
    max_off = max(offs)

    # Row tile: multiple of 128 (lane-dense stores); fp32 out-tile <= ~128 KiB; try to
    # give medium layers >= 2 grid steps for megacore sharding.
    cap = max(128, min(TM_MAX, (32768 // Cp) // 128 * 128))
    tm = min(cap, max(128, _round_up(-(-M_out // 2), 128)))
    Mg = _round_up(M_out, tm)
    n_blk = 1 + (-(-max_off // tm))        # window = n_blk consecutive row tiles
    rows_a = Mg + (n_blk - 1) * tm

    Kc = T * Kp
    Kpad = _round_up(Kc, 128)              # pad contraction dim for the MXU

    a = xp.astype(jnp.bfloat16).reshape(Cin, M_out)
    a = jnp.pad(a, ((0, Kp - Cin), (0, rows_a - M_out)))

    w = jnp.pad(w_taps.astype(jnp.bfloat16), ((0, 0), (0, Kp - Cin), (0, Cp - Cout)))
    w = jnp.transpose(w, (2, 0, 1)).reshape(Cp, Kc)     # W[cout, t*Kp + cin]
    w = jnp.pad(w, ((0, 0), (0, Kpad - Kc)))
    b = jnp.pad(bias.astype(jnp.float32), (0, Cp - Cout)).reshape(Cp, 1)

    kernel = functools.partial(
        _conv_tap_kernel, n_blk=n_blk, offsets=offs, k_pad=Kpad - Kc,
        roll_sign=_roll_sign())

    a_specs = [pl.BlockSpec((Kp, tm), (lambda i, k=k: (0, i + k))) for k in range(n_blk)]

    out = pl.pallas_call(
        kernel,
        out_shape=jax.ShapeDtypeStruct((Cp, Mg), jnp.float32),
        grid_spec=pltpu.PrefetchScalarGridSpec(
            num_scalar_prefetch=0,
            grid=(Mg // tm,),
            in_specs=a_specs + [
                pl.BlockSpec((Cp, Kpad), lambda i: (0, 0)),   # weights: fetched once
                pl.BlockSpec((Cp, 1), lambda i: (0, 0)),      # bias
            ],
            out_specs=pl.BlockSpec((Cp, tm), lambda i: (0, i)),
        ),
        compiler_params=pltpu.CompilerParams(
            dimension_semantics=("parallel",),
            vmem_limit_bytes=32 * 1024 * 1024,
        ),
        cost_estimate=pl.CostEstimate(
            flops=int(2 * Mg * Kpad * Cp),
            transcendentals=0,
            bytes_accessed=int(n_blk * Mg * Kp * 2 + Cp * Kpad * 2 + Mg * Cp * 4),
        ),
    )(*([a] * n_blk), w, b)

    out = out[:Cout, :M_out].reshape(Cout, N, Dp, Hp, Wp)
    return out[:, :, :Do, :Ho, :Wo]


# ---------------------------------------------------------------------------
# Conv3d (k=3, s=1, p=1) and ConvTranspose3d (k=3, s=2, p=1, op=1)
# ---------------------------------------------------------------------------
def conv3d_same(x, w, b):
    """x: (Cin, N, D, H, W); w: (3,3,3,Cin,Cout) -> (Cout, N, D, H, W)."""
    Cin, N, D, H, W = x.shape
    Cout = w.shape[-1]
    xp = jnp.pad(x.astype(jnp.bfloat16), ((0, 0), (0, 0), (1, 1), (1, 1), (1, 1)))
    taps = [(kd, kh, kw) for kd in range(3) for kh in range(3) for kw in range(3)]
    return conv_taps(xp, taps, w.reshape(27, Cin, Cout), b, (D, H, W))


# Per-axis sub-pixel decomposition of ConvTranspose(k=3, s=2, p=1, op=1):
#   out[2m]   = x[m] * w[1]
#   out[2m+1] = x[m] * w[2] + x[m+1] * w[0]     (x right-padded by one zero)
# parity -> ((input_offset, weight_index), ...)
_AXIS_TAPS = {0: ((0, 1),), 1: ((0, 2), (1, 0))}


def conv_trans_block(x, p):
    """ConvTranspose3d + BN + LeakyReLU.  Weight layout (kd,kh,kw,Cin,Cout) follows
    out[o] = sum_{i,k: 2i-1+k=o} x[i] w[k] (torch weight permuted (2,3,4,0,1), no flip);
    weights here are synthetic."""
    Cin, N, D, H, W = x.shape
    w, b = p["w"], p["b"]
    Cout = w.shape[-1]

    xp = jnp.pad(x.astype(jnp.bfloat16), ((0, 0), (0, 0), (0, 1), (0, 1), (0, 1)))
    taps = list(itertools.product((0, 1), (0, 1), (0, 1)))     # the 8 corner offsets

    # One weight matrix per (tap, parity-group); groups packed along the Cout axis.
    # NOTE: ~58% of wg is structural zeros; acceptable here (tiny layers).
    wcols = []
    for pd, ph, pw_ in itertools.product((0, 1), (0, 1), (0, 1)):
        ad, ah, aw = dict(_AXIS_TAPS[pd]), dict(_AXIS_TAPS[ph]), dict(_AXIS_TAPS[pw_])
        rows = []
        for od, oh, ow in taps:
            if od in ad and oh in ah and ow in aw:
                rows.append(w[ad[od], ah[oh], aw[ow]])          # (Cin, Cout)
            else:
                rows.append(jnp.zeros((Cin, Cout), w.dtype))
        wcols.append(jnp.stack(rows, axis=0))                   # (8, Cin, Cout)
    wg = jnp.concatenate(wcols, axis=-1)                        # (8, Cin, 8*Cout)
    bg = jnp.tile(b, 8)

    y = conv_taps(xp, taps, wg, bg, (D, H, W))                  # (8*Cout, N, D, H, W)
    y = y.reshape(2, 2, 2, Cout, N, D, H, W)
    y = jnp.transpose(y, (3, 4, 5, 0, 6, 1, 7, 2)).reshape(Cout, N, 2 * D, 2 * H, 2 * W)
    y = batchnorm(y, p["gamma"], p["beta"])
    return leaky_relu(y)


# ---------------------------------------------------------------------------
# Elementwise / pooling glue (channels-first; torch training-mode BatchNorm3d semantics)
# ---------------------------------------------------------------------------
def batchnorm(x, gamma, beta, eps=1e-5):
    mean = jnp.mean(x, axis=(1, 2, 3, 4), keepdims=True)
    var = jnp.mean(jnp.square(x - mean), axis=(1, 2, 3, 4), keepdims=True)  # biased
    g = gamma.reshape(-1, 1, 1, 1, 1)
    bb = beta.reshape(-1, 1, 1, 1, 1)
    return (x - mean) * jax.lax.rsqrt(var + eps) * g + bb


def leaky_relu(x, slope=0.2):
    return jnp.where(x >= 0, x, slope * x)


def maxpool3d(x):
    C, N, D, H, W = x.shape
    return x.reshape(C, N, D // 2, 2, H // 2, 2, W // 2, 2).max(axis=(3, 5, 7))


# ---------------------------------------------------------------------------
# U-Net building blocks
# ---------------------------------------------------------------------------
def conv_bn_act(x, p):            # conv_block_3d
    return leaky_relu(batchnorm(conv3d_same(x, p["w"], p["b"]), p["gamma"], p["beta"]))


def conv_bn(x, p):                # second half of conv_block_2_3d (no activation)
    return batchnorm(conv3d_same(x, p["w"], p["b"]), p["gamma"], p["beta"])


def conv_block_2(x, params2):     # conv_block_2_3d
    p1, p2 = params2
    return conv_bn(conv_bn_act(x, p1), p2)


# ---------------------------------------------------------------------------
# Parameter init (deterministic, synthetic; shapes follow the torch __init__)
# ---------------------------------------------------------------------------
def init_conv(key, cin, cout):
    kw, kb = jax.random.split(key)
    bound = 1.0 / jnp.sqrt(jnp.float32(cin * 27))
    return {
        "w": jax.random.uniform(kw, (3, 3, 3, cin, cout), jnp.float32, -bound, bound),
        "b": jax.random.uniform(kb, (cout,), jnp.float32, -bound, bound),
        "gamma": jnp.ones((cout,), jnp.float32),
        "beta": jnp.zeros((cout,), jnp.float32),
    }


def init_params(key, in_dim, out_dim, nf):
    keys = iter(jax.random.split(key, 64))

    def c2(cin, cout):
        return (init_conv(next(keys), cin, cout), init_conv(next(keys), cout, cout))

    p = {}
    p["down_1"] = c2(in_dim, nf)
    p["down_2"] = c2(nf, nf * 2)
    p["down_3"] = c2(nf * 2, nf * 4)
    p["down_4"] = c2(nf * 4, nf * 8)
    p["bridge"] = c2(nf * 8, nf * 16)
    p["trans_0"] = init_conv(next(keys), nf * 16, nf * 16)
    p["up_0"] = c2(nf * 24, nf * 8)
    p["trans_1"] = init_conv(next(keys), nf * 8, nf * 8)
    p["up_1"] = c2(nf * 12, nf * 4)
    p["trans_2"] = init_conv(next(keys), nf * 4, nf * 4)
    p["up_2"] = c2(nf * 6, nf * 2)
    p["trans_3"] = init_conv(next(keys), nf * 2, nf * 2)
    p["up_3"] = c2(nf * 3, nf)
    p["out"] = init_conv(next(keys), nf, out_dim)
    return p


# ---------------------------------------------------------------------------
# Full forward pass (mirrors Unet3D_test.forward; torch dim=1 concat == axis 0 here)
# ---------------------------------------------------------------------------
def unet3d_forward(x_ncdhw, params):
    x = jnp.transpose(x_ncdhw, (1, 0, 2, 3, 4))        # internal (C, N, D, H, W) layout

    down_1 = conv_block_2(x, params["down_1"])
    pool_1 = maxpool3d(down_1)
    down_2 = conv_block_2(pool_1, params["down_2"])
    pool_2 = maxpool3d(down_2)
    down_3 = conv_block_2(pool_2, params["down_3"])
    pool_3 = maxpool3d(down_3)
    down_4 = conv_block_2(pool_3, params["down_4"])
    pool_4 = maxpool3d(down_4)

    bridge = conv_block_2(pool_4, params["bridge"])

    trans_0 = conv_trans_block(bridge, params["trans_0"])
    up_0 = conv_block_2(jnp.concatenate([trans_0, down_4], axis=0), params["up_0"])

    trans_1 = conv_trans_block(up_0, params["trans_1"])
    up_1 = conv_block_2(jnp.concatenate([trans_1, down_3], axis=0), params["up_1"])

    trans_2 = conv_trans_block(up_1, params["trans_2"])
    up_2 = conv_block_2(jnp.concatenate([trans_2, down_2], axis=0), params["up_2"])

    trans_3 = conv_trans_block(up_2, params["trans_3"])
    up_3 = conv_block_2(jnp.concatenate([trans_3, down_1], axis=0), params["up_3"])

    out = conv_bn_act(up_3, params["out"])
    return jnp.transpose(out, (1, 0, 2, 3, 4))          # back to NCDHW


if __name__ == "__main__":
    _roll_sign()  # resolve the pltpu.roll direction once, eagerly

    # --- spot-check of the fused tap-conv kernel against the XLA conv ---------------
    ck1, ck2 = jax.random.split(jax.random.PRNGKey(1))
    xt = jax.random.normal(ck1, (3, 1, 6, 6, 6), jnp.float32)        # (C, N, D, H, W)
    wt = jax.random.normal(ck2, (3, 3, 3, 3, 5), jnp.float32) * 0.1  # (kd,kh,kw,Cin,Cout)
    bt = jnp.zeros((5,), jnp.float32)
    got = conv3d_same(xt, wt, bt)
    ref = jax.lax.conv_general_dilated(
        jnp.transpose(xt, (1, 0, 2, 3, 4)).astype(jnp.bfloat16).astype(jnp.float32),
        jnp.transpose(wt, (4, 3, 0, 1, 2)).astype(jnp.bfloat16).astype(jnp.float32),
        window_strides=(1, 1, 1),
        padding=((1, 1), (1, 1), (1, 1)),
        dimension_numbers=("NCDHW", "OIDHW", "NCDHW"))
    ref = jnp.transpose(ref, (1, 0, 2, 3, 4))
    err = float(jnp.max(jnp.abs(got - ref)))
    assert err < 5e-2, f"conv spot-check failed, max abs err={err}"

    # --- full network -----------------------------------------------------------------
    key = jax.random.PRNGKey(0)
    kx, kp = jax.random.split(key)

    in_dim, out_dim, nf = 1, 1, 2
    B, S = 1, 16                       # S must be divisible by 16 (4 pooling levels)

    x_ncdhw = jax.random.normal(kx, (B, in_dim, S, S, S), jnp.float32)
    params = init_params(kp, in_dim, out_dim, nf)

    fwd = jax.jit(unet3d_forward)
    y = jax.block_until_ready(fwd(x_ncdhw, params))

    assert y.shape == (B, out_dim, S, S, S), y.shape
    assert bool(jnp.all(jnp.isfinite(y)))
    print("KERNEL_OK")
</pallas_src>

<mosaic_0001>
module attributes {stable_mosaic.version = 11 : i64} {
  func.func @k(%arg0: memref<8x128xi32, #tpu.memory_space<vmem>>, %arg1: memref<8x128xi32, #tpu.memory_space<vmem>>) attributes {dimension_semantics = [], scalar_prefetch = 0 : i64, scratch_operands = 0 : i64, tpu.core_type = #tpu.core_type<tc>} {
    %c0 = arith.constant 0 : index
    %c0_0 = arith.constant 0 : index
    %0 = vector.load %arg0[%c0, %c0_0] : memref<8x128xi32, #tpu.memory_space<vmem>>, vector<8x128xi32>
    %c1_i32 = arith.constant 1 : i32
    %1 = tpu.dynamic_rotate %0 by %c1_i32 dim 1 : vector<8x128xi32>, i32 -> vector<8x128xi32>
    %c0_1 = arith.constant 0 : index
    %c0_2 = arith.constant 0 : index
    %2 = vector.load %arg1[%c0_1, %c0_2] : memref<8x128xi32, #tpu.memory_space<vmem>>, vector<8x128xi32>
    tpu.vector_store %arg1[%c0_1, %c0_2], %1 {strides = array<i32>} : memref<8x128xi32, #tpu.memory_space<vmem>>, vector<8x128xi32>,
    return
  }
}

</mosaic_0001>

<bundles_post_ra>
// kernel: tpu_custom_call.1
= control target key start
LH: loop header
LB: loop body
LE: loop exit
PB: predicated region body
PF: predicated region fallthrough
CT: control target
= control target key end

     0   :  { %6 = vsyncpa [#allocation3], 0  ;;  %s106_s0 = inlined_call_operand.hbm [shape: s32[8,128], index: 0, kind: input, shape index: {}]   ;;  %s107_s1 = inlined_call_operand.hbm [shape: s32[8,128], index: 1, kind: output, shape index: {}]  }
   0x1   :  { %7 = vsyncpa [#allocation4], 0  ;;  %s87_s6 = smov [#allocation2]  }
   0x2   :  { %s14_s7 = sshll.u32 %s87_s6, 4  ;;  %s15_s7 = int_to_ptr.vmem [resolvable:$true] %s14_s7 }
   0x3   :  { %s51_s8 = scalar_lea.vmem %s15_s7, 128  ;;  %p56_p1 = scmp.lt.s32.totalorder %s15_s7, %s15_s7 }
   0x4   :  { %p52_p0 = scmp.ne.s32.totalorder %s15_s7, %s51_s8  ;;  %p57_p2 = scmp.lt.s32.totalorder %s51_s8, %s51_s8 }
   0x6   :  { %p58_p3 = por %p57_p2, %p56_p1 }
   0x8   :  { %p59_p4 = pnand %p58_p3, %p52_p0 }
   0xa   :  { %62 = shalt.err (!%p59_p4)
}
   0xb   :  { %17 = dma.hbm_to_vmem [thread:$0]  %s106_s0, 128, %s15_s7, [#allocation3]  }
   0xc   :  { %83 = dma.done.wait [#allocation3], 128  }
   0xd   :  { %84 = vsyncadd [#allocation3], 4294967168  ;;  %v21_v0 = vld [vmem:[#allocation2] sm:$0xff]  ;;  %s88_s11 = smov 1   ;;  %s89_s12 = smov [#allocation5]  }
   0xe   :  { %22 = vrot.lane.b32.xlu0 %v21_v0, %s88_s11  ;;  %s31_s13 = sshll.u32 %s89_s12, 4  ;;  %s32_s13 = int_to_ptr.vmem [resolvable:$true] %s31_s13 }
   0xf   :  { %s63_s14 = scalar_lea.vmem %s32_s13, 128  ;;  %p68_p6 = scmp.lt.s32.totalorder %s32_s13, %s32_s13 }
  0x10   :  { %p64_p5 = scmp.ne.s32.totalorder %s32_s13, %s63_s14  ;;  %p69_p7 = scmp.lt.s32.totalorder %s63_s14, %s63_s14 }
  0x12   :  { %p70_p8 = por %p69_p7, %p68_p6 }
  0x14   :  { %p71_p9 = pnand %p70_p8, %p64_p5 }
  0x80   :  { %v23_v1 = vpop.permute.xlu0 %22 }
  0x81   :  { %24 = vst [vmem:[#allocation5] sm:$0xff] %v23_v1 }
  0x82   :  { %74 = shalt.err (!%p71_p9)
}
  0x83   :  { %34 = dma.vmem_to_hbm [thread:$0]  %s32_s13, 128, %s107_s1, [#allocation4]  }
  0x84   :  { %85 = dma.done.wait [#allocation4], 128  }
  0x85   :  { %86 = vsyncadd [#allocation4], 4294967168 }
  0x86   :  { %38 = vsyncpa [#allocation3], 1 }
  0x87   :  { %39 = vsyncpa [#allocation4], 1 }

</bundles_post_ra>
